<compile_context>
chip_gen: v5e
topology: v5e:2x2
jax: 0.10.0
libtpu: 0.0.40
codegen_flags: <defaults>
</compile_context>

<pallas_src>
import functools

import jax
import jax.numpy as jnp
from jax import lax
from jax.experimental import pallas as pl
from jax.experimental.pallas import tpu as pltpu


# ---------------------------------------------------------------------------
# Fast sin: single-step Cody-Waite reduction by pi + degree-11 odd polynomial.
# ---------------------------------------------------------------------------
_INV_PI = 0.3183098861837907
# pi split into three limited-precision f32 pieces (4x the Cephes sinf DP1..3),
# so n * PI_k is exact for the |n| encountered with moderate arguments.
_PI_1 = 3.140625
_PI_2 = 9.67502593994140625e-4
_PI_3 = 1.509957990978376e-7
# Taylor (odd) coefficients; truncation error on [-pi/2, pi/2] ~ 6e-8.
_S3 = -0.16666666666666666
_S5 = 0.008333333333333333
_S7 = -0.0001984126984126984
_S9 = 2.7557319223985893e-06
_S11 = -2.505210838544172e-08


def _fast_sin(x):
    """sin(x) for f32 x with moderate magnitude; error ~1e-6 abs."""
    n = jnp.floor(x * _INV_PI + 0.5)          # nearest multiple of pi
    r = x - n * _PI_1
    r = r - n * _PI_2
    r = r - n * _PI_3                          # r in ~[-pi/2, pi/2]
    s = r * r
    p = _S11
    p = p * s + _S9
    p = p * s + _S7
    p = p * s + _S5
    p = p * s + _S3
    y = r + r * (s * p)                        # sin(r)
    # sin(x) = (-1)^n * sin(r); parity computed in float (no int conversions).
    parity = n - 2.0 * jnp.floor(n * 0.5)      # 0.0 or 1.0
    return y * (1.0 - 2.0 * parity)


# ---------------------------------------------------------------------------
# Kernel
# ---------------------------------------------------------------------------
def _sine_kernel(x_ref, o_ref, *, w0, fast, chunk_rows):
    n_rows = x_ref.shape[0]

    def compute(x):
        xf = x.astype(jnp.float32) * w0        # f32 internal compute
        y = _fast_sin(xf) if fast else jnp.sin(xf)
        return y.astype(o_ref.dtype)

    if chunk_rows >= n_rows:
        # Small block: single shot.
        o_ref[...] = compute(x_ref[...])
    else:
        # Large DMA block: process in bounded row-chunks to cap f32 temps.
        n_full = n_rows // chunk_rows

        def body(c, carry):
            r0 = pl.multiple_of(c * chunk_rows, 8)
            o_ref[pl.ds(r0, chunk_rows), :] = compute(
                x_ref[pl.ds(r0, chunk_rows), :])
            return carry

        lax.fori_loop(0, n_full, body, 0)

        rem = n_rows - n_full * chunk_rows
        if rem:
            r0 = n_full * chunk_rows           # static
            o_ref[pl.ds(r0, rem), :] = compute(x_ref[pl.ds(r0, rem), :])


# ---------------------------------------------------------------------------
# Wrapper / layout plumbing
# ---------------------------------------------------------------------------
_CHUNK_F32_BYTES = 512 * 1024      # compute-chunk size (f32) inside the kernel
_MAX_LANE = 4096


def _device_kind():
    try:
        return jax.devices()[0].device_kind.lower()
    except Exception:
        return ""


def _chip_tuning(kind):
    """Returns (target_block_bytes, vmem_cap_bytes or None)."""
    if "v7" in kind:
        return 6 << 20, 48 << 20       # 64 MiB physical VMEM per TC
    if "v6" in kind:
        return 4 << 20, 64 << 20       # 128 MiB physical
    if "v5" in kind and ("lite" in kind or "v5e" in kind):
        return 3 << 20, 48 << 20       # 128 MiB physical, 16 MiB default scoped
    if "v5" in kind:
        return 4 << 20, 64 << 20       # v5p
    return 2 << 20, None               # unknown / older: stay conservative


def _pick_lane_width(n):
    """Largest 128-multiple divisor of n (<= _MAX_LANE), preferring >=8 rows."""
    best = None
    start = min(_MAX_LANE, (n // 128) * 128)
    for cand in range(start, 127, -128):
        if n % cand == 0:
            if best is None:
                best = cand
            if n // cand >= 8:
                return cand
    return best


def _sine_slab(slab, w0, dtype, fast):
    rows, lane = slab.shape
    itemsize = jnp.dtype(dtype).itemsize
    sublane = max(8, 32 // itemsize)           # 8 f32 / 16 bf16 / 32 int8
    kind = _device_kind()
    block_bytes, vmem_cap = _chip_tuning(kind)

    # DMA block rows.
    target_rows = max(sublane, block_bytes // (lane * itemsize))
    tile_rows = min(target_rows, rows)
    if tile_rows < rows:
        tile_rows = max(sublane, (tile_rows // sublane) * sublane)
    # v7x has 2 TensorCores: make sure the grid has >= 2 steps to shard.
    if "v7" in kind and tile_rows == rows and rows >= 2 * sublane:
        half = -(-rows // 2)
        tile_rows = -(-half // sublane) * sublane

    grid = (pl.cdiv(rows, tile_rows),)

    # In-kernel compute chunk (bounds f32 temporaries independent of DMA block).
    chunk_target = max(sublane,
                       ((_CHUNK_F32_BYTES // (lane * 4)) // sublane) * sublane)
    chunk_rows = min(tile_rows, chunk_target)

    block_storage = tile_rows * lane * itemsize
    if vmem_cap is None:
        vmem_limit = None
    else:
        vmem_limit = int(min(vmem_cap,
                             max(32 << 20, 4 * block_storage + (12 << 20))))

    n_elems = rows * lane
    cost = pl.CostEstimate(
        flops=(30 if fast else 10) * n_elems,
        transcendentals=0 if fast else n_elems,
        bytes_accessed=2 * n_elems * itemsize)

    kernel = functools.partial(_sine_kernel, w0=float(w0), fast=bool(fast),
                               chunk_rows=int(chunk_rows))
    return pl.pallas_call(
        kernel,
        out_shape=jax.ShapeDtypeStruct((rows, lane), dtype),
        grid_spec=pltpu.PrefetchScalarGridSpec(
            num_scalar_prefetch=0,
            grid=grid,
            in_specs=[pl.BlockSpec((tile_rows, lane), lambda i: (i, 0))],
            out_specs=pl.BlockSpec((tile_rows, lane), lambda i: (i, 0)),
        ),
        compiler_params=pltpu.CompilerParams(
            dimension_semantics=("parallel",),
            vmem_limit_bytes=vmem_limit),
        cost_estimate=cost,
    )(slab)


def sine(x, w0=1.0, fast=True):
    """Elementwise sin(w0 * x) for any-shaped input (e.g. NCHW)."""
    orig_shape = x.shape
    dtype = x.dtype
    n = x.size
    if n == 0:
        return x

    flat = x.reshape(-1)
    n_main = (n // 128) * 128
    if n_main == 0:
        # Tiny tensor: plain JAX is cheaper than a kernel launch.
        y = jnp.sin(w0 * flat.astype(jnp.float32)).astype(dtype)
        return y.reshape(orig_shape)

    if n_main == n:
        main, tail = flat, None
    else:
        # 128-aligned prefix through the kernel; <128-element tail in plain jnp.
        main, tail = flat[:n_main], flat[n_main:]

    lane = _pick_lane_width(n_main)            # guaranteed: n_main % 128 == 0
    rows = n_main // lane
    out_main = _sine_slab(main.reshape(rows, lane), w0, dtype, fast).reshape(-1)

    if tail is None:
        out_flat = out_main
    else:
        out_tail = jnp.sin(w0 * tail.astype(jnp.float32)).astype(dtype)
        out_flat = jnp.concatenate([out_main, out_tail])
    return out_flat.reshape(orig_shape)


class Sine:
    """Sine activation with scaling (JAX/Pallas port of the PyTorch module)."""

    def __init__(self, w0=1.0, fast=True):
        self.w0 = w0
        self.fast = fast

    def __call__(self, x):
        return sine(x, self.w0, self.fast)


if __name__ == "__main__":
    key = jax.random.PRNGKey(0)
    w0 = 30.0  # typical SIREN omega_0; module default is 1.0 but any float works
    module = Sine(w0=w0)

    # 1) f32 NCHW input consistent with how Sine is used inside GIMM/raft.
    x = jax.random.normal(key, (2, 4, 16, 16), dtype=jnp.float32)
    y = jax.block_until_ready(module(x))
    ref = jnp.sin(w0 * x)
    assert y.shape == x.shape and y.dtype == x.dtype
    assert jnp.allclose(y, ref, atol=1e-5, rtol=1e-5)

    # 2) bf16 path: kernel computes in f32 internally.
    xb = x.astype(jnp.bfloat16)
    yb = jax.block_until_ready(module(xb))
    ref_b = jnp.sin(w0 * xb.astype(jnp.float32)).astype(jnp.bfloat16)
    assert yb.shape == xb.shape and yb.dtype == xb.dtype
    assert jnp.allclose(yb.astype(jnp.float32), ref_b.astype(jnp.float32),
                        atol=3e-2, rtol=3e-2)

    # 3) Size not divisible by 128: exercises the prefix + tail path (no pad).
    key2 = jax.random.PRNGKey(1)
    xo = jax.random.normal(key2, (7, 11, 13), dtype=jnp.float32)  # 1001 elems
    yo = jax.block_until_ready(module(xo))
    refo = jnp.sin(w0 * xo)
    assert yo.shape == xo.shape and yo.dtype == xo.dtype
    assert jnp.allclose(yo, refo, atol=1e-5, rtol=1e-5)

    print("KERNEL_OK")
</pallas_src>

<mosaic_0001>
module attributes {stable_mosaic.version = 11 : i64} {
  func.func @_sine_kernel(%arg0: i32, %arg1: memref<8x256xf32, #tpu.memory_space<vmem>>, %arg2: memref<8x256xf32, #tpu.memory_space<vmem>>) attributes {dimension_semantics = [#tpu.dimension_semantics<parallel>], iteration_bounds = array<i64: 1>, scalar_prefetch = 0 : i64, scratch_operands = 0 : i64, tpu.core_type = #tpu.core_type<tc>, window_params = [{transform_indices = @transform_0, window_bounds = array<i64: 8, 256>}, {transform_indices = @transform_1, window_bounds = array<i64: 8, 256>}]} {
    %c0 = arith.constant 0 : index
    %c0_0 = arith.constant 0 : index
    %0 = vector.load %arg1[%c0, %c0_0] : memref<8x256xf32, #tpu.memory_space<vmem>>, vector<8x256xf32>
    %cst = arith.constant 3.000000e+01 : f32
    %1 = vector.broadcast %cst : f32 to vector<8x256xf32>
    %2 = arith.mulf %0, %1 : vector<8x256xf32>
    %cst_1 = arith.constant 0.318309873 : f32
    %3 = vector.broadcast %cst_1 : f32 to vector<8x256xf32>
    %4 = arith.mulf %2, %3 : vector<8x256xf32>
    %cst_2 = arith.constant 5.000000e-01 : f32
    %5 = vector.broadcast %cst_2 : f32 to vector<8x256xf32>
    %6 = arith.addf %4, %5 : vector<8x256xf32>
    %7 = math.floor %6 : vector<8x256xf32>
    %cst_3 = arith.constant 3.140625 : f32
    %8 = vector.broadcast %cst_3 : f32 to vector<8x256xf32>
    %9 = arith.mulf %7, %8 : vector<8x256xf32>
    %10 = arith.subf %2, %9 : vector<8x256xf32>
    %cst_4 = arith.constant 9.67502593E-4 : f32
    %11 = vector.broadcast %cst_4 : f32 to vector<8x256xf32>
    %12 = arith.mulf %7, %11 : vector<8x256xf32>
    %13 = arith.subf %10, %12 : vector<8x256xf32>
    %cst_5 = arith.constant 1.50995803E-7 : f32
    %14 = vector.broadcast %cst_5 : f32 to vector<8x256xf32>
    %15 = arith.mulf %7, %14 : vector<8x256xf32>
    %16 = arith.subf %13, %15 : vector<8x256xf32>
    %17 = arith.mulf %16, %16 : vector<8x256xf32>
    %cst_6 = arith.constant -2.50521079E-8 : f32
    %18 = vector.broadcast %cst_6 : f32 to vector<8x256xf32>
    %19 = arith.mulf %18, %17 : vector<8x256xf32>
    %cst_7 = arith.constant 2.75573188E-6 : f32
    %20 = vector.broadcast %cst_7 : f32 to vector<8x256xf32>
    %21 = arith.addf %19, %20 : vector<8x256xf32>
    %22 = arith.mulf %21, %17 : vector<8x256xf32>
    %cst_8 = arith.constant -1.98412701E-4 : f32
    %23 = vector.broadcast %cst_8 : f32 to vector<8x256xf32>
    %24 = arith.addf %22, %23 : vector<8x256xf32>
    %25 = arith.mulf %24, %17 : vector<8x256xf32>
    %cst_9 = arith.constant 0.00833333377 : f32
    %26 = vector.broadcast %cst_9 : f32 to vector<8x256xf32>
    %27 = arith.addf %25, %26 : vector<8x256xf32>
    %28 = arith.mulf %27, %17 : vector<8x256xf32>
    %cst_10 = arith.constant -0.166666672 : f32
    %29 = vector.broadcast %cst_10 : f32 to vector<8x256xf32>
    %30 = arith.addf %28, %29 : vector<8x256xf32>
    %31 = arith.mulf %17, %30 : vector<8x256xf32>
    %32 = arith.mulf %16, %31 : vector<8x256xf32>
    %33 = arith.addf %16, %32 : vector<8x256xf32>
    %cst_11 = arith.constant 5.000000e-01 : f32
    %34 = vector.broadcast %cst_11 : f32 to vector<8x256xf32>
    %35 = arith.mulf %7, %34 : vector<8x256xf32>
    %36 = math.floor %35 : vector<8x256xf32>
    %cst_12 = arith.constant 2.000000e+00 : f32
    %37 = vector.broadcast %cst_12 : f32 to vector<8x256xf32>
    %38 = arith.mulf %37, %36 : vector<8x256xf32>
    %39 = arith.subf %7, %38 : vector<8x256xf32>
    %cst_13 = arith.constant 2.000000e+00 : f32
    %40 = vector.broadcast %cst_13 : f32 to vector<8x256xf32>
    %41 = arith.mulf %40, %39 : vector<8x256xf32>
    %cst_14 = arith.constant 1.000000e+00 : f32
    %42 = vector.broadcast %cst_14 : f32 to vector<8x256xf32>
    %43 = arith.subf %42, %41 : vector<8x256xf32>
    %44 = arith.mulf %33, %43 : vector<8x256xf32>
    %c0_15 = arith.constant 0 : index
    %c0_16 = arith.constant 0 : index
    %45 = vector.load %arg2[%c0_15, %c0_16] : memref<8x256xf32, #tpu.memory_space<vmem>>, vector<8x256xf32>
    tpu.vector_store %arg2[%c0_15, %c0_16], %44 {strides = array<i32>} : memref<8x256xf32, #tpu.memory_space<vmem>>, vector<8x256xf32>,
    return
  }
  func.func @transform_0(%arg0: i32) -> (i32, i32) {
    %c0_i32 = arith.constant 0 : i32
    %c0_i32_0 = arith.constant 0 : i32
    return %arg0, %c0_i32 : i32, i32
  }
  func.func @transform_1(%arg0: i32) -> (i32, i32) {
    %c0_i32 = arith.constant 0 : i32
    %c0_i32_0 = arith.constant 0 : i32
    return %arg0, %c0_i32 : i32, i32
  }
}

</mosaic_0001>

<bundles_post_ra>
// kernel: tpu_custom_call.1
= control target key start
LH: loop header
LB: loop body
LE: loop exit
PB: predicated region body
PF: predicated region fallthrough
CT: control target
= control target key end

     0   :  { %6 = vsyncpa [#allocation3], 0  ;;  %s174_s0 = inlined_call_operand.hbm [shape: f32[8,256], index: 0, kind: input, shape index: {}]   ;;  %s175_s1 = inlined_call_operand.hbm [shape: f32[8,256], index: 1, kind: output, shape index: {}]  }
   0x1   :  { %7 = vsyncpa [#allocation4], 0  ;;  %s13_s8 = sshll.u32 %s174_s0, 4  ;;  %s156_s9 = smov [#allocation2]   ;;  %s14_s8 = int_to_ptr.hbm [resolvable:$true] %s13_s8 }
   0x2   :  { %s15_s10 = sshll.u32 %s156_s9, 4  ;;  %s16_s10 = int_to_ptr.vmem [resolvable:$true] %s15_s10 }
   0x3   :  { %18 = dma.hbm_to_vmem [thread:$0]  %s14_s8, 256, %s16_s10, [#allocation3]  }
   0x4   :  { %152 = dma.done.wait [#allocation3], 256  }
   0x5   :  { %153 = vsyncadd [#allocation3], 4294967040  ;;  %v23_v0 = vld [vmem:[#allocation2] sm:$0xff]  ;;  %v24_v1 = vld [vmem:[#allocation2 + $0x8] sm:$0xff]  ;;  %s157_s0 = smov [#allocation5]   ;;  %s92_s14 = sshll.u32 %s175_s1, 4  ;;  %s93_s14 = int_to_ptr.hbm [resolvable:$true] %s92_s14 }
   0x6   :  { %v25_v2 = vmul.f32 30.0, %v23_v0  ;;  %v26_v3 = vmul.f32 30.0, %v24_v1  ;;  %s90_s11 = sshll.u32 %s157_s0, 4  ;;  %s91_s11 = int_to_ptr.vmem [resolvable:$true] %s90_s11 }
   0x8   :  { %v27_v4 = vmul.f32 0.31830987, %v25_v2  ;;  %v28_v5 = vmul.f32 0.31830987, %v26_v3 }
   0xa   :  { %v29_v6 = vadd.f32 0.5, %v27_v4  ;;  %v30_v7 = vadd.f32 0.5, %v28_v5 }
   0xc   :  { %v31_v8 = vfloor.f32 %v29_v6  ;;  %v32_v9 = vfloor.f32 %v30_v7 }
   0xe   :  { %v33_v10 = vmul.f32 3.140625, %v31_v8  ;;  %v37_v11 = vmul.f32 0.0009675026, %v31_v8  ;;  %v34_v12 = vmul.f32 3.140625, %v32_v9  ;;  %v38_v13 = vmul.f32 0.0009675026, %v32_v9 }
   0xf   :  { %v41_v15 = vmul.f32 1.509958e-07, %v31_v8  ;;  %v42_v17 = vmul.f32 1.509958e-07, %v32_v9  ;;  %v69_v23 = vmul.f32 0.5, %v31_v8  ;;  %v70_v25 = vmul.f32 0.5, %v32_v9 }
  0x10   :  { %v35_v14 = vsub.f32 %v25_v2, %v33_v10  ;;  %v36_v16 = vsub.f32 %v26_v3, %v34_v12 }
  0x11   :  { %v71_v29 = vfloor.f32 %v69_v23  ;;  %v72_v31 = vfloor.f32 %v70_v25 }
  0x12   :  { %v39_v18 = vsub.f32 %v35_v14, %v37_v11  ;;  %v40_v19 = vsub.f32 %v36_v16, %v38_v13 }
  0x13   :  { %v73_v35 = vmul.f32 2.0, %v71_v29  ;;  %v74_v37 = vmul.f32 2.0, %v72_v31 }
  0x14   :  { %v43_v20 = vsub.f32 %v39_v18, %v41_v15  ;;  %v44_v21 = vsub.f32 %v40_v19, %v42_v17 }
  0x15   :  { %v75_v41 = vsub.f32 %v31_v8, %v73_v35  ;;  %v76_v43 = vsub.f32 %v32_v9, %v74_v37 }
  0x16   :  { %v45_v22 = vmul.f32 %v43_v20, %v43_v20  ;;  %v46_v24 = vmul.f32 %v44_v21, %v44_v21 }
  0x17   :  { %v77_v47 = vmul.f32 2.0, %v75_v41  ;;  %v78_v49 = vmul.f32 2.0, %v76_v43 }
  0x18   :  { %v47_v26 = vmul.f32 -2.5052108e-08, %v45_v22  ;;  %v48_v27 = vmul.f32 -2.5052108e-08, %v46_v24 }
  0x19   :  { %v79_v53 = vsub.f32 1.0, %v77_v47  ;;  %v80_v55 = vsub.f32 1.0, %v78_v49 }
  0x1a   :  { %v49_v28 = vadd.f32 2.7557319e-06, %v47_v26  ;;  %v50_v30 = vadd.f32 2.7557319e-06, %v48_v27 }
  0x1c   :  { %v51_v32 = vmul.f32 %v49_v28, %v45_v22  ;;  %v52_v33 = vmul.f32 %v50_v30, %v46_v24 }
  0x1e   :  { %v53_v34 = vadd.f32 -0.0001984127, %v51_v32  ;;  %v54_v36 = vadd.f32 -0.0001984127, %v52_v33 }
  0x20   :  { %v55_v38 = vmul.f32 %v53_v34, %v45_v22  ;;  %v56_v39 = vmul.f32 %v54_v36, %v46_v24 }
  0x22   :  { %v57_v40 = vadd.f32 0.008333334, %v55_v38  ;;  %v58_v42 = vadd.f32 0.008333334, %v56_v39 }
  0x24   :  { %v59_v44 = vmul.f32 %v57_v40, %v45_v22  ;;  %v60_v45 = vmul.f32 %v58_v42, %v46_v24 }
  0x26   :  { %v61_v46 = vadd.f32 -0.16666667, %v59_v44  ;;  %v62_v48 = vadd.f32 -0.16666667, %v60_v45 }
  0x28   :  { %v63_v50 = vmul.f32 %v61_v46, %v45_v22  ;;  %v64_v51 = vmul.f32 %v62_v48, %v46_v24 }
  0x2a   :  { %v65_v52 = vmul.f32 %v63_v50, %v43_v20  ;;  %v66_v54 = vmul.f32 %v64_v51, %v44_v21 }
  0x2c   :  { %v67_v56 = vadd.f32 %v65_v52, %v43_v20  ;;  %v68_v57 = vadd.f32 %v66_v54, %v44_v21 }
  0x2e   :  { %v81_v58 = vmul.f32 %v79_v53, %v67_v56  ;;  %v82_v59 = vmul.f32 %v80_v55, %v68_v57 }
  0x30   :  { %83 = vst [vmem:[#allocation5] sm:$0xff] %v81_v58 }
  0x31   :  { %84 = vst [vmem:[#allocation5 + $0x8] sm:$0xff] %v82_v59 }
  0x32   :  { %95 = dma.vmem_to_hbm [thread:$0]  %s91_s11, 256, %s93_s14, [#allocation4]  }
  0x33   :  { %154 = dma.done.wait [#allocation4], 256  }
  0x34   :  { %155 = vsyncadd [#allocation4], 4294967040 }
  0x35   :  { %100 = vsyncpa [#allocation3], 1 }
  0x36   :  { %101 = vsyncpa [#allocation4], 1 }

</bundles_post_ra>
